<compile_context>
chip_gen: v7x
topology: tpu7x:2x2x1
jax: 0.10.0
libtpu: 0.0.40
codegen_flags: <defaults>
</compile_context>

<pallas_src>
import functools

import jax
import jax.numpy as jnp
from jax.experimental import pallas as pl
from jax.experimental.pallas import tpu as pltpu


def _center_loss_kernel(feat_ref, cent_ref, out_ref, *, batch_size):
    # feat_ref: (TB, D) native-dtype tile of features
    # cent_ref: (TB, D) native-dtype tile of centers[label]
    # out_ref:  (1, 1)  f32 per-tile partial sum (SMEM-staged)
    i = pl.program_id(0)
    tile_rows = feat_ref.shape[0]

    diff = feat_ref[...].astype(jnp.float32) - cent_ref[...].astype(jnp.float32)
    row_sums = jnp.sum(diff * diff, axis=-1, keepdims=True)          # (TB, 1)

    # Mask the ragged rows of the last (partial) tile.  jnp.where, not a 0/1
    # multiply, so garbage rows in a partial block cannot poison via 0*NaN.
    row_idx = i * tile_rows + jax.lax.broadcasted_iota(
        jnp.int32, (tile_rows, 1), 0)
    row_sums = jnp.where(row_idx < batch_size, row_sums, 0.0)

    out_ref[0, 0] = jnp.sum(row_sums)


def center_loss(label, feat, centers, *, size_average=True):
    """label: (B,) int, feat: (B, ...) flattened to (B, D), centers: (C, D).
    Returns scalar f32 loss == sum((feat - centers[label])**2) / 2 / B."""
    batch_size = feat.shape[0]
    feat2d = feat.reshape(batch_size, -1)
    B, D = feat2d.shape
    C, Dc = centers.shape
    if D != Dc:
        raise ValueError(
            "Center's dim: {0} should be equal to input feature's dim: {1}".format(Dc, D))

    denom = float(batch_size) if size_average else 1.0
    inv_scale = 1.0 / (2.0 * denom)

    # Gather centers[label] once in the wrapper and stream it per tile.
    # Works for any num_classes; no resident centers in VMEM, no one-hot matmul.
    label_i32 = label.reshape(-1).astype(jnp.int32)
    centers_batch = jnp.take(centers, label_i32, axis=0)              # (B, D)

    # Batch tile: as large as fits a ~24 MiB double-buffered pipeline budget
    # (2 streamed inputs x 2 buffers each), multiple of 8, no input padding --
    # the kernel masks the ragged last tile.
    bytes_per_row = D * (feat2d.dtype.itemsize + centers_batch.dtype.itemsize)
    pipeline_budget = 24 * 1024 * 1024
    fit_rows = max(8, pipeline_budget // (2 * bytes_per_row))
    if B <= 8:
        tb = B                                    # single block == full array
    else:
        tb = max(8, min(1024, (B // 8) * 8, (fit_rows // 8) * 8))
    num_tiles = pl.cdiv(B, tb)

    # Explicit VMEM budget (critical on v7x: 64 MiB physical, 32 MiB default).
    pipeline_bytes = 2 * tb * bytes_per_row       # double-buffered feat + cent
    vmem_limit = int(min(64 * 1024 * 1024,
                         max(8 * 1024 * 1024, pipeline_bytes + (4 << 20))))

    kernel = functools.partial(_center_loss_kernel, batch_size=B)

    partials = pl.pallas_call(
        kernel,
        out_shape=jax.ShapeDtypeStruct((num_tiles, 1), jnp.float32),
        grid_spec=pltpu.PrefetchScalarGridSpec(
            num_scalar_prefetch=0,
            grid=(num_tiles,),
            in_specs=[
                pl.BlockSpec((tb, D), lambda i: (i, 0)),   # feat tile
                pl.BlockSpec((tb, D), lambda i: (i, 0)),   # centers[label] tile
            ],
            out_specs=pl.BlockSpec((1, 1), lambda i: (i, 0),
                                   memory_space=pltpu.SMEM),
        ),
        compiler_params=pltpu.CompilerParams(
            dimension_semantics=("parallel",),   # independent per-tile partials
            vmem_limit_bytes=vmem_limit,
        ),
    )(feat2d, centers_batch)

    return jnp.sum(partials) * inv_scale


if __name__ == "__main__":
    # Small, deterministic example: num_classes=10, feat_dim=32, batch=8.
    num_classes = 10
    feat_dim = 32
    batch = 8

    key = jax.random.PRNGKey(0)
    k_centers, k_feat, k_label = jax.random.split(key, 3)

    # nn.Parameter(torch.randn(num_classes, feat_dim)) -> standard normal init
    centers = jax.random.normal(k_centers, (num_classes, feat_dim), dtype=jnp.float32)
    feat = jax.random.normal(k_feat, (batch, feat_dim), dtype=jnp.float32)
    label = jax.random.randint(k_label, (batch,), 0, num_classes, dtype=jnp.int32)

    loss = jax.block_until_ready(center_loss(label, feat, centers, size_average=True))
    ref = jnp.sum((feat - centers[label]) ** 2) / 2.0 / batch
    assert jnp.allclose(loss, ref, rtol=1e-5, atol=1e-5), (loss, ref)

    # Ragged-tile path: batch not a multiple of the tile exercises the
    # in-kernel jnp.where mask (no wrapper-side padding exists anymore).
    batch2 = 13
    k_feat2, k_label2 = jax.random.split(k_feat)
    feat2 = jax.random.normal(k_feat2, (batch2, feat_dim), dtype=jnp.float32)
    label2 = jax.random.randint(k_label2, (batch2,), 0, num_classes, dtype=jnp.int32)
    loss2 = jax.block_until_ready(center_loss(label2, feat2, centers, size_average=True))
    ref2 = jnp.sum((feat2 - centers[label2]) ** 2) / 2.0 / batch2
    assert jnp.allclose(loss2, ref2, rtol=1e-5, atol=1e-5), (loss2, ref2)

    print("KERNEL_OK")
</pallas_src>

<mosaic_0001>
module attributes {stable_mosaic.version = 11 : i64} {
  func.func @_center_loss_kernel(%arg0: i32, %arg1: memref<8x32xf32, #tpu.memory_space<vmem>>, %arg2: memref<8x32xf32, #tpu.memory_space<vmem>>, %arg3: memref<1x1xf32, #tpu.memory_space<smem>>) attributes {dimension_semantics = [#tpu.dimension_semantics<parallel>], iteration_bounds = array<i64: 1>, scalar_prefetch = 0 : i64, scratch_operands = 0 : i64, tpu.core_type = #tpu.core_type<tc>, window_params = [{transform_indices = @transform_0, window_bounds = array<i64: 8, 32>}, {transform_indices = @transform_1, window_bounds = array<i64: 8, 32>}, {transform_indices = @transform_2, window_bounds = array<i64: 1, 1>}]} {
    %c0 = arith.constant 0 : index
    %c0_0 = arith.constant 0 : index
    %0 = vector.load %arg1[%c0, %c0_0] : memref<8x32xf32, #tpu.memory_space<vmem>>, vector<8x32xf32>
    %c0_1 = arith.constant 0 : index
    %c0_2 = arith.constant 0 : index
    %1 = vector.load %arg2[%c0_1, %c0_2] : memref<8x32xf32, #tpu.memory_space<vmem>>, vector<8x32xf32>
    %2 = arith.subf %0, %1 : vector<8x32xf32>
    %3 = arith.mulf %2, %2 : vector<8x32xf32>
    %cst = arith.constant dense<0.000000e+00> : vector<8xf32>
    %4 = vector.multi_reduction <add>, %3, %cst [1] : vector<8x32xf32> to vector<8xf32>
    %5 = vector.shape_cast %4 : vector<8xf32> to vector<8x1xf32>
    %c8_i32 = arith.constant 8 : i32
    %6 = arith.muli %arg0, %c8_i32 : i32
    %7 = tpu.iota {dimensions = array<i32: 0>} : vector<8x1xi32>
    %8 = vector.broadcast %6 : i32 to vector<8x1xi32>
    %9 = arith.addi %8, %7 : vector<8x1xi32>
    %c8_i32_3 = arith.constant 8 : i32
    %10 = vector.broadcast %c8_i32_3 : i32 to vector<8x1xi32>
    %11 = arith.cmpi slt, %9, %10 : vector<8x1xi32>
    %cst_4 = arith.constant 0.000000e+00 : f32
    %12 = vector.broadcast %cst_4 : f32 to vector<8x1xf32>
    %13 = arith.select %11, %5, %12 : vector<8x1xi1>, vector<8x1xf32>
    %14 = vector.shape_cast %13 : vector<8x1xf32> to vector<1x8x1xf32>
    %cst_5 = arith.constant dense<0.000000e+00> : vector<1xf32>
    %15 = vector.multi_reduction <add>, %14, %cst_5 [1, 2] : vector<1x8x1xf32> to vector<1xf32>
    %16 = vector.shape_cast %15 : vector<1xf32> to vector<1x1x1xf32>
    %17 = vector.extract %16[0, 0, 0] : f32 from vector<1x1x1xf32>
    %c0_6 = arith.constant 0 : index
    %c0_7 = arith.constant 0 : index
    %18 = memref.load %arg3[%c0_6, %c0_7] : memref<1x1xf32, #tpu.memory_space<smem>>
    memref.store %17, %arg3[%c0_6, %c0_7] : memref<1x1xf32, #tpu.memory_space<smem>>
    return
  }
  func.func @transform_0(%arg0: i32) -> (i32, i32) {
    %c0_i32 = arith.constant 0 : i32
    %c0_i32_0 = arith.constant 0 : i32
    return %arg0, %c0_i32 : i32, i32
  }
  func.func @transform_1(%arg0: i32) -> (i32, i32) {
    %c0_i32 = arith.constant 0 : i32
    %c0_i32_0 = arith.constant 0 : i32
    return %arg0, %c0_i32 : i32, i32
  }
  func.func @transform_2(%arg0: i32) -> (i32, i32) {
    %c0_i32 = arith.constant 0 : i32
    %c0_i32_0 = arith.constant 0 : i32
    return %arg0, %c0_i32 : i32, i32
  }
}

</mosaic_0001>

<bundles_post_ra>
// kernel: tpu_custom_call.1
= control target key start
LH: loop header
LB: loop body
LE: loop exit
PB: predicated region body
PF: predicated region fallthrough
CT: control target
= control target key end

     0   :  { %7 = vsyncpa [#allocation3], 0  ;;  %s198_s0 = inlined_call_operand.hbm [shape: f32[8,32], index: 0, kind: input, shape index: {}]   ;;  %s199_s1 = inlined_call_operand.hbm [shape: f32[8,32], index: 1, kind: input, shape index: {}]   ;;  %s200_s2 = inlined_call_operand.hbm [shape: f32[1,1], index: 2, kind: output, shape index: {}]  }
   0x1   :  { %8 = vsyncpa [#allocation6], 0 }
   0x2   :  { %9 = vsyncpa [#allocation4], 0  ;;  %s144_s9 = smov [#allocation2]   ;;  %s145_s11 = smov [#allocation5]  }
   0x3   :  { %s16_s10 = sshll.u32 %s144_s9, 4  ;;  %s26_s12 = sshll.u32 %s145_s11, 4  ;;  %s17_s10 = int_to_ptr.vmem [resolvable:$true] %s16_s10  ;;  %s27_s12 = int_to_ptr.vmem [resolvable:$true] %s26_s12 }
   0x4   :  { %s84_s15 = scalar_lea.hbm %s198_s0, 128 }
   0x5   :  { %p85_p0 = scmp.ne.s32.totalorder %s198_s0, %s84_s15  ;;  %p88_p1 = scmp.lt.u32.totalorder %s84_s15, %s198_s0 }
   0x7   :  { %p90_p2 = pnand %p88_p1, %p85_p0 }
   0x9   :  { %93 = shalt.err (!%p90_p2)
}
   0xa   :  { %s94_s20 = scalar_lea.vmem %s17_s10, 128  ;;  %p99_p4 = scmp.lt.s32.totalorder %s17_s10, %s17_s10 }
   0xb   :  { %p95_p3 = scmp.ne.s32.totalorder %s17_s10, %s94_s20  ;;  %p100_p5 = scmp.lt.s32.totalorder %s94_s20, %s94_s20 }
   0xd   :  { %p101_p6 = por %p100_p5, %p99_p4 }
   0xf   :  { %p102_p7 = pnand %p101_p6, %p95_p3 }
  0x11   :  { %105 = shalt.err (!%p102_p7)
}
  0x12   :  { %19 = dma.hbm_to_vmem [thread:$0]  %s198_s0, 128, %s17_s10, [#allocation3]  }
  0x13   :  { %s106_s25 = scalar_lea.hbm %s199_s1, 128 }
  0x14   :  { %p107_p8 = scmp.ne.s32.totalorder %s199_s1, %s106_s25  ;;  %p110_p9 = scmp.lt.u32.totalorder %s106_s25, %s199_s1 }
  0x16   :  { %p112_p10 = pnand %p110_p9, %p107_p8 }
  0x18   :  { %115 = shalt.err (!%p112_p10)
}
  0x19   :  { %s116_s30 = scalar_lea.vmem %s27_s12, 128  ;;  %p121_p12 = scmp.lt.s32.totalorder %s27_s12, %s27_s12 }
  0x1a   :  { %p117_p11 = scmp.ne.s32.totalorder %s27_s12, %s116_s30  ;;  %p122_p13 = scmp.lt.s32.totalorder %s116_s30, %s116_s30 }
  0x1c   :  { %p123_p0 = por %p122_p13, %p121_p12 }
  0x1e   :  { %p124_p1 = pnand %p123_p0, %p117_p11 }
  0x20   :  { %127 = shalt.err (!%p124_p1)
}
  0x21   :  { %29 = dma.hbm_to_vmem [thread:$0]  %s199_s1, 128, %s27_s12, [#allocation6]  }
  0x22   :  { %138 = dma.done.wait [#allocation3], 128  }
  0x23   :  { %139 = vsyncadd [#allocation3], 4294967168 }
  0x24   :  { %140 = dma.done.wait [#allocation6], 128  }
  0x25   :  { %141 = vsyncadd [#allocation6], 4294967168  ;;  %v36_v0 = vld [vmem:[#allocation2] sm:$0xff]  ;;  %v37_v1 = vld [vmem:[#allocation5] sm:$0xff]  ;;  %vm40_vm0 = vcmask 261120   ;;  %vm51_vm1 = vcmask 7168  }
  0x26   :  { %v38_v2 = vsub.f32 %v36_v0, %v37_v1  ;;  %s128_s6 = scalar_lea.hbm %s200_s2, 16 }
  0x27   :  { %p129_p2 = scmp.ne.s32.totalorder %s200_s2, %s128_s6  ;;  %p132_p3 = scmp.lt.u32.totalorder %s128_s6, %s200_s2 }
  0x28   :  { %v39_v3 = vmul.f32 %v38_v2, %v38_v2 }
  0x29   :  { %p134_p4 = pnand %p132_p3, %p129_p2 }
  0x2a   :  { %v41_v4 = vsel %vm40_vm0, %v39_v3, 0.0 }
  0x2b   :  { %42 = vadd.xlane.f32.xlu0 %v41_v4 }
  0xb8   :  { %v43_v5 = vpop.xlane.xlu0 %42 }
  0xb9   :  { %v52_v6 = vsel %vm51_vm1, %v43_v5, 0.0 }
  0xba   :  { %53 = vadd.xlane.f32.xlu0 %v52_v6 }
 0x147   :  { %v54_v7 = vpop.xlane.xlu0 %53 }
 0x148   :  { %v55_v8 = vrot.slane %v54_v7, 4 }
 0x14a   :  { %v56_v9 = vadd.f32 %v55_v8, %v54_v7 }
 0x14c   :  { %v57_v10 = vrot.slane %v56_v9, 2 }
 0x14e   :  { %v58_v11 = vadd.f32 %v57_v10, %v56_v9 }
 0x150   :  { %v59_v12 = vrot.slane %v58_v11, 1 }
 0x152   :  { %v60_v13 = vadd.f32 %v59_v12, %v58_v11 }
 0x154   :  { %79 = vpush %v60_v13 }
 0x185   :  { %s80_s1 = spop %79 }
 0x186   :  { %63 = sst [smem:[#allocation7]] %s80_s1 }
 0x187   :  { %137 = shalt.err (!%p134_p4)
}
 0x188   :  { %s146_s11 = smov [#allocation7]  }
 0x189   :  { %71 = dma.smem_to_hbm %s146_s11, 16, %s200_s2, [#allocation4]  }
 0x18a   :  { %142 = dma.done.wait [#allocation4], 16  }
 0x18b   :  { %143 = vsyncadd [#allocation4], 4294967280 }
 0x18c   :  { %75 = sfence }
 0x18d   :  { %76 = vsyncpa [#allocation3], 1 }
 0x18e   :  { %77 = vsyncpa [#allocation6], 1 }
 0x18f   :  { %78 = vsyncpa [#allocation4], 1 }

</bundles_post_ra>
